<compile_context>
chip_gen: v5e
topology: v5e:2x2
jax: 0.10.0
libtpu: 0.0.40
codegen_flags: <defaults>
</compile_context>

<pallas_src>
import jax
import jax.numpy as jnp
from jax.experimental import pallas as pl
from jax.experimental.pallas import tpu as pltpu

_LANE = 128
_MAX_TILE_B = 2048  # batch tile for large B; multiple of 128 (v5e) and 256 (v6e/v7x)


def _round_up(x, m):
    return (x + m - 1) // m * m


def _mlp_kernel(x_ref, w1_ref, b1_ref, w2_ref, b2_ref, w3_ref, b3_ref, o_ref):
    # All three matmuls + bias + ReLU fused per batch tile.
    # Matmul inputs may be bf16; accumulation / bias / ReLU stay f32 (no bf16
    # VPU dependence -> safe on v5e as well).
    x = x_ref[...]
    h1 = jnp.dot(x, w1_ref[...], preferred_element_type=jnp.float32) + b1_ref[...]
    h1 = jnp.maximum(h1, 0.0).astype(w2_ref.dtype)
    h2 = jnp.dot(h1, w2_ref[...], preferred_element_type=jnp.float32) + b2_ref[...]
    h2 = jnp.maximum(h2, 0.0).astype(w3_ref.dtype)
    out = jnp.dot(h2, w3_ref[...], preferred_element_type=jnp.float32) + b3_ref[...]
    o_ref[...] = out.astype(o_ref.dtype)


def prepare_params(params, compute_dtype=jnp.bfloat16):
    """One-time parameter prep (hoisted out of the per-call path).

    * pads the hidden dim H to a multiple of 128 (no-op at H=128) so the w2
      contraction / intermediates are lane-aligned; padding is mathematically
      inert (ReLU(0 + 0) = 0 and the padded w2/w3 rows are zero),
    * casts matmul weights to `compute_dtype` (bf16 default: native MXU input
      format); biases stay f32 because accumulation / bias / ReLU are f32,
    * leaves F (input feature dim) and O (output dim) UNPADDED: those blocks
      use the full array extent, so no HBM-traffic amplification.
    """
    w1, b1 = params["w1"], params["b1"]
    w2, b2 = params["w2"], params["b2"]
    w3, b3 = params["w3"], params["b3"]
    H = w1.shape[1]
    dh = _round_up(H, _LANE) - H
    if dh:
        w1 = jnp.pad(w1, ((0, 0), (0, dh)))
        b1 = jnp.pad(b1, ((0, 0), (0, dh)))
        w2 = jnp.pad(w2, ((0, dh), (0, dh)))
        b2 = jnp.pad(b2, ((0, 0), (0, dh)))
        w3 = jnp.pad(w3, ((0, dh), (0, 0)))
    if compute_dtype is not None:
        w1 = w1.astype(compute_dtype)
        w2 = w2.astype(compute_dtype)
        w3 = w3.astype(compute_dtype)
    return {
        "w1": w1, "b1": b1.astype(jnp.float32),
        "w2": w2, "b2": b2.astype(jnp.float32),
        "w3": w3, "b3": b3.astype(jnp.float32),
    }


def feature_matching_forward(x, prepared, *, tile_b=None):
    """Fused MLP forward.

    x: [B, F] float32 (cast to the weight dtype for the matmul inputs)
    prepared: output of prepare_params() -> w1[F,H_p], b1[1,H_p], w2[H_p,H_p],
              b2[1,H_p], w3[H_p,O], b3[1,O]
    """
    B, F = x.shape
    w1, b1 = prepared["w1"], prepared["b1"]
    w2, b2 = prepared["w2"], prepared["b2"]
    w3, b3 = prepared["w3"], prepared["b3"]
    assert w1.shape[0] == F, "prepared params do not match x feature dim"
    H_p = w1.shape[1]
    O = w3.shape[1]

    # --- MXU-aligned batch tile -------------------------------------------------
    if tile_b is None:
        if B <= _MAX_TILE_B:
            tile_b = _round_up(B, 8)      # single grid step, no pipeline overhead
        else:
            tile_b = _MAX_TILE_B          # amortizes ~0.35us/step, large DMAs
    tile_b = max(8, _round_up(tile_b, 8))
    B_p = _round_up(B, tile_b)
    num_steps = B_p // tile_b

    # Per-call prep on x only: cast to matmul input dtype, pad batch if needed.
    x_p = x.astype(w1.dtype)
    if B_p != B:
        x_p = jnp.pad(x_p, ((0, B_p - B), (0, 0)))

    # --- BlockSpecs ---------------------------------------------------------------
    # x last dim = F (full array dim) and output last dim = O (full array dim):
    # both satisfy the (8,128) rule without padding; weights are resident
    # (constant index_map -> fetched once).
    in_specs = [
        pl.BlockSpec((tile_b, F), lambda i: (i, 0)),   # x tile
        pl.BlockSpec((F, H_p), lambda i: (0, 0)),      # w1
        pl.BlockSpec((1, H_p), lambda i: (0, 0)),      # b1
        pl.BlockSpec((H_p, H_p), lambda i: (0, 0)),    # w2
        pl.BlockSpec((1, H_p), lambda i: (0, 0)),      # b2
        pl.BlockSpec((H_p, O), lambda i: (0, 0)),      # w3
        pl.BlockSpec((1, O), lambda i: (0, 0)),        # b3
    ]
    out_specs = pl.BlockSpec((tile_b, O), lambda i: (i, 0))

    flops = 2 * B_p * (F * H_p + H_p * H_p + H_p * O)
    bytes_accessed = int(
        x_p.nbytes + w1.nbytes + b1.nbytes + w2.nbytes + b2.nbytes
        + w3.nbytes + b3.nbytes + B_p * O * 4
    )

    out = pl.pallas_call(
        _mlp_kernel,
        out_shape=jax.ShapeDtypeStruct((B_p, O), jnp.float32),
        grid_spec=pltpu.PrefetchScalarGridSpec(
            num_scalar_prefetch=0,
            grid=(num_steps,),
            in_specs=in_specs,
            out_specs=out_specs,
        ),
        compiler_params=pltpu.CompilerParams(
            # Batch axis is independent -> shard across TCs where available.
            # TODO(synk): on v7x, verify both TensorCores are active; if not,
            # switch to pltpu.CORE_PARALLEL for this axis.
            dimension_semantics=("parallel",),
        ),
        cost_estimate=pl.CostEstimate(
            flops=flops, transcendentals=0, bytes_accessed=bytes_accessed,
        ),
    )(x_p, w1, b1, w2, b2, w3, b3)

    if B_p != B:
        out = out[:B]
    return out


def init_params(key, input_size, hidden_size=128, output_size=7):
    """Deterministic init mirroring nn.Linear's U(-1/sqrt(fan_in), 1/sqrt(fan_in))."""
    ks = jax.random.split(key, 6)

    def lin(kw, kb, fan_in, fan_out):
        bound = 1.0 / jnp.sqrt(jnp.float32(fan_in))
        w = jax.random.uniform(kw, (fan_in, fan_out), jnp.float32, -bound, bound)
        b = jax.random.uniform(kb, (1, fan_out), jnp.float32, -bound, bound)
        return w, b

    w1, b1 = lin(ks[0], ks[1], input_size, hidden_size)
    w2, b2 = lin(ks[2], ks[3], hidden_size, hidden_size)
    w3, b3 = lin(ks[4], ks[5], hidden_size, output_size)
    return {"w1": w1, "b1": b1, "w2": w2, "b2": b2, "w3": w3, "b3": b3}


def reference_forward(x, p):
    h1 = jnp.maximum(x @ p["w1"] + p["b1"], 0.0)
    h2 = jnp.maximum(h1 @ p["w2"] + p["b2"], 0.0)
    return h2 @ p["w3"] + p["b3"]


if __name__ == "__main__":
    # Small shapes consistent with the module defaults:
    # batch=16, input_size=32, hidden_size=128, output_size=7.
    B, F, H, O = 16, 32, 128, 7

    key = jax.random.PRNGKey(0)
    k_x, k_p = jax.random.split(key)

    x = jax.random.normal(k_x, (B, F), jnp.float32)
    params = init_params(k_p, input_size=F, hidden_size=H, output_size=O)

    ref = reference_forward(x, params)

    # f32 matmul path (single grid step at this size).
    prepared_f32 = prepare_params(params, compute_dtype=None)
    out_f32 = feature_matching_forward(x, prepared_f32)
    out_f32 = jax.block_until_ready(out_f32)
    assert out_f32.shape == (B, O)
    assert jnp.allclose(out_f32, ref, atol=1e-4, rtol=1e-4), "f32 mismatch vs reference"

    # Default bf16 matmul inputs with f32 accumulation (inference path).
    prepared_bf16 = prepare_params(params)  # bf16 weights, f32 biases
    out_bf16 = feature_matching_forward(x, prepared_bf16)
    out_bf16 = jax.block_until_ready(out_bf16)
    assert jnp.allclose(out_bf16, ref, atol=5e-2, rtol=5e-2), "bf16 mismatch vs reference"

    # Multi-step grid (exercises the batch pipeline path with tiny tiles).
    out_tiled = feature_matching_forward(x, prepared_bf16, tile_b=8)
    out_tiled = jax.block_until_ready(out_tiled)
    assert jnp.allclose(out_tiled, ref, atol=5e-2, rtol=5e-2), "tiled mismatch vs reference"

    print("KERNEL_OK")
</pallas_src>

<mosaic_0001>
module attributes {stable_mosaic.version = 11 : i64} {
  func.func @_mlp_kernel(%arg0: i32, %arg1: memref<16x32xf32, #tpu.memory_space<vmem>>, %arg2: memref<32x128xf32, #tpu.memory_space<vmem>>, %arg3: memref<1x128xf32, #tpu.memory_space<vmem>>, %arg4: memref<128x128xf32, #tpu.memory_space<vmem>>, %arg5: memref<1x128xf32, #tpu.memory_space<vmem>>, %arg6: memref<128x7xf32, #tpu.memory_space<vmem>>, %arg7: memref<1x7xf32, #tpu.memory_space<vmem>>, %arg8: memref<16x7xf32, #tpu.memory_space<vmem>>) attributes {dimension_semantics = [#tpu.dimension_semantics<parallel>], iteration_bounds = array<i64: 1>, scalar_prefetch = 0 : i64, scratch_operands = 0 : i64, tpu.core_type = #tpu.core_type<tc>, window_params = [{transform_indices = @transform_0, window_bounds = array<i64: 16, 32>}, {pipeline_mode = #tpu.pipeline_mode<synchronous>, transform_indices = @transform_1, window_bounds = array<i64: 32, 128>}, {pipeline_mode = #tpu.pipeline_mode<synchronous>, transform_indices = @transform_2, window_bounds = array<i64: 1, 128>}, {pipeline_mode = #tpu.pipeline_mode<synchronous>, transform_indices = @transform_3, window_bounds = array<i64: 128, 128>}, {pipeline_mode = #tpu.pipeline_mode<synchronous>, transform_indices = @transform_4, window_bounds = array<i64: 1, 128>}, {pipeline_mode = #tpu.pipeline_mode<synchronous>, transform_indices = @transform_5, window_bounds = array<i64: 128, 7>}, {pipeline_mode = #tpu.pipeline_mode<synchronous>, transform_indices = @transform_6, window_bounds = array<i64: 1, 7>}, {transform_indices = @transform_7, window_bounds = array<i64: 16, 7>}]} {
    %c0 = arith.constant 0 : index
    %c0_0 = arith.constant 0 : index
    %0 = vector.load %arg1[%c0, %c0_0] : memref<16x32xf32, #tpu.memory_space<vmem>>, vector<16x32xf32>
    %c0_1 = arith.constant 0 : index
    %c0_2 = arith.constant 0 : index
    %1 = vector.load %arg2[%c0_1, %c0_2] : memref<32x128xf32, #tpu.memory_space<vmem>>, vector<32x128xf32>
    %cst = arith.constant dense<0.000000e+00> : vector<16x128xf32>
    %2 = tpu.matmul %0, %1, %cst {dimension_numbers = #tpu.dot_dimension_numbers<[1], [0], [0], [1], [0, 0, 1, 1], [], []>} : vector<16x32xf32>, vector<32x128xf32>, vector<16x128xf32> -> vector<16x128xf32>
    %c0_3 = arith.constant 0 : index
    %c0_4 = arith.constant 0 : index
    %3 = vector.load %arg3[%c0_3, %c0_4] : memref<1x128xf32, #tpu.memory_space<vmem>>, vector<1x128xf32>
    %4 = vector.broadcast %3 : vector<1x128xf32> to vector<16x128xf32>
    %5 = arith.addf %2, %4 : vector<16x128xf32>
    %cst_5 = arith.constant 0.000000e+00 : f32
    %6 = vector.broadcast %cst_5 : f32 to vector<16x128xf32>
    %7 = arith.maximumf %5, %6 : vector<16x128xf32>
    %c0_6 = arith.constant 0 : index
    %c0_7 = arith.constant 0 : index
    %8 = vector.load %arg4[%c0_6, %c0_7] : memref<128x128xf32, #tpu.memory_space<vmem>>, vector<128x128xf32>
    %cst_8 = arith.constant dense<0.000000e+00> : vector<16x128xf32>
    %9 = tpu.matmul %7, %8, %cst_8 {dimension_numbers = #tpu.dot_dimension_numbers<[1], [0], [0], [1], [0, 0, 1, 1], [], []>} : vector<16x128xf32>, vector<128x128xf32>, vector<16x128xf32> -> vector<16x128xf32>
    %c0_9 = arith.constant 0 : index
    %c0_10 = arith.constant 0 : index
    %10 = vector.load %arg5[%c0_9, %c0_10] : memref<1x128xf32, #tpu.memory_space<vmem>>, vector<1x128xf32>
    %11 = vector.broadcast %10 : vector<1x128xf32> to vector<16x128xf32>
    %12 = arith.addf %9, %11 : vector<16x128xf32>
    %cst_11 = arith.constant 0.000000e+00 : f32
    %13 = vector.broadcast %cst_11 : f32 to vector<16x128xf32>
    %14 = arith.maximumf %12, %13 : vector<16x128xf32>
    %c0_12 = arith.constant 0 : index
    %c0_13 = arith.constant 0 : index
    %15 = vector.load %arg6[%c0_12, %c0_13] : memref<128x7xf32, #tpu.memory_space<vmem>>, vector<128x7xf32>
    %cst_14 = arith.constant dense<0.000000e+00> : vector<16x7xf32>
    %16 = tpu.matmul %14, %15, %cst_14 {dimension_numbers = #tpu.dot_dimension_numbers<[1], [0], [0], [1], [0, 0, 1, 1], [], []>} : vector<16x128xf32>, vector<128x7xf32>, vector<16x7xf32> -> vector<16x7xf32>
    %c0_15 = arith.constant 0 : index
    %c0_16 = arith.constant 0 : index
    %17 = vector.load %arg7[%c0_15, %c0_16] : memref<1x7xf32, #tpu.memory_space<vmem>>, vector<1x7xf32>
    %18 = vector.broadcast %17 : vector<1x7xf32> to vector<16x7xf32>
    %19 = arith.addf %16, %18 : vector<16x7xf32>
    %c0_17 = arith.constant 0 : index
    %c0_18 = arith.constant 0 : index
    %20 = vector.load %arg8[%c0_17, %c0_18] : memref<16x7xf32, #tpu.memory_space<vmem>>, vector<16x7xf32>
    tpu.vector_store %arg8[%c0_17, %c0_18], %19 {strides = array<i32>} : memref<16x7xf32, #tpu.memory_space<vmem>>, vector<16x7xf32>,
    return
  }
  func.func @transform_0(%arg0: i32) -> (i32, i32) {
    %c0_i32 = arith.constant 0 : i32
    %c0_i32_0 = arith.constant 0 : i32
    return %arg0, %c0_i32 : i32, i32
  }
  func.func @transform_1(%arg0: i32) -> (i32, i32) {
    %c0_i32 = arith.constant 0 : i32
    %c0_i32_0 = arith.constant 0 : i32
    %c0_i32_1 = arith.constant 0 : i32
    return %c0_i32, %c0_i32_0 : i32, i32
  }
  func.func @transform_2(%arg0: i32) -> (i32, i32) {
    %c0_i32 = arith.constant 0 : i32
    %c0_i32_0 = arith.constant 0 : i32
    %c0_i32_1 = arith.constant 0 : i32
    return %c0_i32, %c0_i32_0 : i32, i32
  }
  func.func @transform_3(%arg0: i32) -> (i32, i32) {
    %c0_i32 = arith.constant 0 : i32
    %c0_i32_0 = arith.constant 0 : i32
    %c0_i32_1 = arith.constant 0 : i32
    return %c0_i32, %c0_i32_0 : i32, i32
  }
  func.func @transform_4(%arg0: i32) -> (i32, i32) {
    %c0_i32 = arith.constant 0 : i32
    %c0_i32_0 = arith.constant 0 : i32
    %c0_i32_1 = arith.constant 0 : i32
    return %c0_i32, %c0_i32_0 : i32, i32
  }
  func.func @transform_5(%arg0: i32) -> (i32, i32) {
    %c0_i32 = arith.constant 0 : i32
    %c0_i32_0 = arith.constant 0 : i32
    %c0_i32_1 = arith.constant 0 : i32
    return %c0_i32, %c0_i32_0 : i32, i32
  }
  func.func @transform_6(%arg0: i32) -> (i32, i32) {
    %c0_i32 = arith.constant 0 : i32
    %c0_i32_0 = arith.constant 0 : i32
    %c0_i32_1 = arith.constant 0 : i32
    return %c0_i32, %c0_i32_0 : i32, i32
  }
  func.func @transform_7(%arg0: i32) -> (i32, i32) {
    %c0_i32 = arith.constant 0 : i32
    %c0_i32_0 = arith.constant 0 : i32
    return %arg0, %c0_i32 : i32, i32
  }
}

</mosaic_0001>

<bundles_post_ra>
// kernel: tpu_custom_call.1
= control target key start
LH: loop header
LB: loop body
LE: loop exit
PB: predicated region body
PF: predicated region fallthrough
CT: control target
= control target key end

     0   :  { %12 = vsyncpa [#allocation3], 0  ;;  %s437_s0 = inlined_call_operand.hbm [shape: f32[16,32], index: 0, kind: input, shape index: {}]   ;;  %s438_s1 = inlined_call_operand.hbm [shape: f32[32,128], index: 1, kind: input, shape index: {}]   ;;  %s439_s2 = inlined_call_operand.vmem [shape: f32[1,128], index: 2, kind: input, shape index: {}]   ;;  %s440_s3 = inlined_call_operand.vmem [shape: f32[128,128], index: 3, kind: input, shape index: {}]   ;;  %s441_s4 = inlined_call_operand.vmem [shape: f32[1,128], index: 4, kind: input, shape index: {}]   ;;  %s442_s5 = inlined_call_operand.vmem [shape: f32[128,7], index: 5, kind: input, shape index: {}]   ;;  %s443_s6 = inlined_call_operand.vmem [shape: f32[1,7], index: 6, kind: input, shape index: {}]   ;;  %s444_s7 = inlined_call_operand.vmem [shape: f32[16,7], index: 7, kind: output, shape index: {}]  }
   0x1   :  { %s18_s26 = sshll.u32 %s437_s0, 4  ;;  %s19_s26 = int_to_ptr.hbm [resolvable:$true] %s18_s26 }
   0x2   :  { %13 = vsyncpa [#allocation5], 0  ;;  %s274_s27 = smov [#allocation2]   ;;  %s31_s8 = sshll.u32 %s438_s1, 4  ;;  %s32_s8 = int_to_ptr.hbm [resolvable:$true] %s31_s8 }
   0x3   :  { %s20_s28 = sshll.u32 %s274_s27, 4  ;;  %s275_s9 = smov 128   ;;  %s21_s28 = int_to_ptr.vmem [resolvable:$true] %s20_s28 }
   0x4   :  { %s276_s10 = smov 8   ;;  %s277_s11 = smov [#allocation4]  }
   0x5   :  { %26 = dma.hbm_to_vmem [thread:$0]  %s19_s26, 256, %s21_s28, [#allocation3], %s275_s9, %s275_s9, %s276_s10  }
   0x6   :  { %s33_s12 = sshll.u32 %s277_s11, 4  ;;  %s34_s12 = int_to_ptr.vmem [resolvable:$true] %s33_s12 }
   0x7   :  { %39 = dma.hbm_to_vmem [thread:$0]  %s32_s8, 512, %s34_s12, [#allocation5], %s275_s9, %s275_s9, %s276_s10  }
   0x8   :  { %270 = dma.done.wait [#allocation3], 256  }
   0x9   :  { %271 = vsyncadd [#allocation3], 4294967040 }
   0xa   :  { %272 = dma.done.wait [#allocation5], 512  }
   0xb   :  { %273 = vsyncadd [#allocation5], 4294966784  ;;  %v63_v0 = vld [vmem:[#allocation4 + $0x18] sm:$0xff]  ;;  %v62_v1 = vld [vmem:[#allocation4 + $0x10] sm:$0xff]  ;;  %vm68_vm0 = vcmask 261120   ;;  %vm188_vm1 = vcmask 56320  }
   0xc   :  { %87 = vmatpush.msra.mxu0 %v63_v0  ;;  %v61_v2 = vld [vmem:[#allocation4 + $0x8] sm:$0xff]  ;;  %v114_v4 = vld [vmem:[%s440_s3 + $0x70] sm:$0xff]  ;;  %v113_v6 = vld [vmem:[%s440_s3 + $0x68] sm:$0xff] }
   0xd   :  { %v115_v3 = vld [vmem:[%s440_s3 + $0x78] sm:$0xff]  ;;  %v60_v5 = vld [vmem:[#allocation4] sm:$0xff]  ;;  %v58_v7 = vld [vmem:[#allocation2] sm:$0xff] }
   0xe   :  { %88 = vmatpush.msra.mxu0 %v62_v1  ;;  %120 = vmatpush.msra.mxu1 %v115_v3  ;;  %v112_v8 = vld [vmem:[%s440_s3 + $0x60] sm:$0xff]  ;;  %v111_v9 = vld [vmem:[%s440_s3 + $0x58] sm:$0xff]  ;;  %v110_v10 = vld [vmem:[%s440_s3 + $0x50] sm:$0xff] }
   0xf   :  { %199 = vmatpush.msra.mxu3 %v115_v3  ;;  %v109_v11 = vld [vmem:[%s440_s3 + $0x48] sm:$0xff]  ;;  %v108_v13 = vld [vmem:[%s440_s3 + $0x40] sm:$0xff]  ;;  %v107_v14 = vld [vmem:[%s440_s3 + $0x38] sm:$0xff] }
  0x10   :  { %89 = vmatpush.msra.mxu0 %v61_v2  ;;  %121 = vmatpush.msra.mxu1 %v114_v4  ;;  %v59_v12 = vld [vmem:[#allocation2 + $0x8] sm:$0xff]  ;;  %v106_v15 = vld [vmem:[%s440_s3 + $0x30] sm:$0xff]  ;;  %v104_v17 = vld [vmem:[%s440_s3 + $0x20] sm:$0xff] }
  0x11   :  { %200 = vmatpush.msra.mxu3 %v114_v4  ;;  %v105_v16 = vld [vmem:[%s440_s3 + $0x28] sm:$0xff]  ;;  %v103_v18 = vld [vmem:[%s440_s3 + $0x18] sm:$0xff]  ;;  %v102_v19 = vld [vmem:[%s440_s3 + $0x10] sm:$0xff] }
  0x12   :  { %90 = vmatpush.msra.mxu0 %v60_v5  ;;  %122 = vmatpush.msra.mxu1 %v113_v6  ;;  %v101_v20 = vld [vmem:[%s440_s3 + $0x8] sm:$0xff]  ;;  %v100_v21 = vld [vmem:[%s440_s3] sm:$0xff]  ;;  %v160_v22 = vld [vmem:[%s442_s5 + $0x78] sm:$0xff] }
  0x13   :  { %197 = vmatmul.msk.f32.vlgmr.msra.gmra.mxu0 %vm68_vm0, %v58_v7  ;;  %201 = vmatpush.msra.mxu3 %v113_v6  ;;  %v159_v23 = vld [vmem:[%s442_s5 + $0x70] sm:$0xff]  ;;  %v158_v24 = vld [vmem:[%s442_s5 + $0x68] sm:$0xff]  ;;  %v157_v25 = vld [vmem:[%s442_s5 + $0x60] sm:$0xff] }
  0x14   :  { %123 = vmatpush.msra.mxu1 %v112_v8  ;;  %165 = vmatpush.msra.mxu2 %v160_v22  ;;  %v156_v26 = vld [vmem:[%s442_s5 + $0x58] sm:$0xff]  ;;  %v155_v27 = vld [vmem:[%s442_s5 + $0x50] sm:$0xff]  ;;  %v154_v28 = vld [vmem:[%s442_s5 + $0x48] sm:$0xff] }
  0x15   :  { %202 = vmatpush.msra.mxu3 %v112_v8  ;;  %v153_v29 = vld [vmem:[%s442_s5 + $0x40] sm:$0xff]  ;;  %v152_v30 = vld [vmem:[%s442_s5 + $0x38] sm:$0xff]  ;;  %v151_v32 = vld [vmem:[%s442_s5 + $0x30] sm:$0xff] }
  0x16   :  { %124 = vmatpush.msra.mxu1 %v111_v9  ;;  %166 = vmatpush.msra.mxu2 %v159_v23  ;;  %v219_v31 = vld [vmem:[%s439_s2] ss:$0 sm:$0xff]  ;;  %v150_v33 = vld [vmem:[%s442_s5 + $0x28] sm:$0xff]  ;;  %v148_v38 = vld [vmem:[%s442_s5 + $0x18] sm:$0xff] }
  0x17   :  { %203 = vmatpush.msra.mxu3 %v111_v9  ;;  %v149_v36 = vld [vmem:[%s442_s5 + $0x20] sm:$0xff]  ;;  %v147_v42 = vld [vmem:[%s442_s5 + $0x10] sm:$0xff]  ;;  %v146_v43 = vld [vmem:[%s442_s5 + $0x8] sm:$0xff] }
  0x18   :  { %125 = vmatpush.msra.mxu1 %v110_v10  ;;  %167 = vmatpush.msra.mxu2 %v158_v24  ;;  %v145_v44 = vld [vmem:[%s442_s5] sm:$0xff] }
  0x19   :  { %204 = vmatpush.msra.mxu3 %v110_v10  ;;  %v220_v45 = vld [vmem:[%s441_s4] ss:$0 sm:$0xff] }
  0x1a   :  { %126 = vmatpush.msra.mxu1 %v109_v11  ;;  %168 = vmatpush.msra.mxu2 %v157_v25  ;;  %v221_v52 = vld [vmem:[%s443_s6] ss:$0 sm:$0xff] }
  0x1b   :  { %198 = vmatmul.msk.f32.gmra.mxu0 %vm68_vm0, %v59_v12  ;;  %205 = vmatpush.msra.mxu3 %v109_v11 }
  0x1c   :  { %127 = vmatpush.msra.mxu1 %v108_v13  ;;  %169 = vmatpush.msra.mxu2 %v156_v26 }
  0x1d   :  { %206 = vmatpush.msra.mxu3 %v108_v13 }
  0x1e   :  { %128 = vmatpush.msra.mxu1 %v107_v14  ;;  %170 = vmatpush.msra.mxu2 %v155_v27 }
  0x1f   :  { %207 = vmatpush.msra.mxu3 %v107_v14 }
  0x20   :  { %129 = vmatpush.msra.mxu1 %v106_v15  ;;  %171 = vmatpush.msra.mxu2 %v154_v28 }
  0x21   :  { %208 = vmatpush.msra.mxu3 %v106_v15 }
  0x22   :  { %130 = vmatpush.msra.mxu1 %v105_v16  ;;  %172 = vmatpush.msra.mxu2 %v153_v29 }
  0x23   :  { %209 = vmatpush.msra.mxu3 %v105_v16 }
  0x24   :  { %131 = vmatpush.msra.mxu1 %v104_v17  ;;  %173 = vmatpush.msra.mxu2 %v152_v30 }
  0x25   :  { %210 = vmatpush.msra.mxu3 %v104_v17 }
  0x26   :  { %132 = vmatpush.msra.mxu1 %v103_v18  ;;  %174 = vmatpush.msra.mxu2 %v151_v32 }
  0x27   :  { %211 = vmatpush.msra.mxu3 %v103_v18 }
  0x28   :  { %133 = vmatpush.msra.mxu1 %v102_v19  ;;  %175 = vmatpush.msra.mxu2 %v150_v33 }
  0x29   :  { %212 = vmatpush.msra.mxu3 %v102_v19 }
  0x2a   :  { %134 = vmatpush.msra.mxu1 %v101_v20  ;;  %176 = vmatpush.msra.mxu2 %v149_v36 }
  0x2b   :  { %213 = vmatpush.msra.mxu3 %v101_v20 }
  0x2c   :  { %135 = vmatpush.msra.mxu1 %v100_v21  ;;  %177 = vmatpush.msra.mxu2 %v148_v38 }
  0x2d   :  { %214 = vmatpush.msra.mxu3 %v100_v21 }
  0x2e   :  { %178 = vmatpush.msra.mxu2 %v147_v42 }
  0x30   :  { %179 = vmatpush.msra.mxu2 %v146_v43 }
  0x32   :  { %180 = vmatpush.msra.mxu2 %v145_v44 }
  0x90   :  { %v92_v34 = vpop.f32.mrf.mxu0 }
  0x91   :  { %v93_v35 = vadd.f32 %v219_v31, %v92_v34 }
  0x93   :  { %v98_v37 = vmax.f32 %v93_v35, 0.0 }
  0x95   :  { %136 = vmatmul.f32.vlgmr.msra.gmra.mxu1 %v98_v37 }
  0x98   :  { %v95_v39 = vpop.f32.mrf.mxu0 }
  0x99   :  { %v96_v40 = vadd.f32 %v219_v31, %v95_v39 }
  0x9b   :  { %v99_v41 = vmax.f32 %v96_v40, 0.0 }
  0x9d   :  { %139 = vmatmul.f32.vlgmr.msra.gmra.mxu3 %v99_v41 }
 0x112   :  { %v137_v46 = vpop.f32.mrf.mxu1 }
 0x113   :  { %v138_v47 = vadd.f32 %v220_v45, %v137_v46 }
 0x115   :  { %v143_v48 = vmax.f32 %v138_v47, 0.0 }
 0x117   :  { %181 = vmatmul.f32.vlgmr.msra.gmra.mxu2 %v143_v48 }
 0x120   :  { %v140_v49 = vpop.f32.mrf.mxu3 }
 0x121   :  { %v141_v50 = vadd.f32 %v220_v45, %v140_v49 }
 0x123   :  { %v144_v51 = vmax.f32 %v141_v50, 0.0 }
 0x125   :  { %184 = vmatmul.f32.gmra.mxu2 %v144_v51 }
 0x19a   :  { %v182_v53 = vpop.f32.mrf.mxu2 }
 0x19b   :  { %v183_v54 = vadd.f32 %v221_v52, %v182_v53 }
 0x19d   :  { %189 = vst.msk [vmem:[%s444_s7] sm:$0xff] %vm188_vm1, %v183_v54 }
 0x1a8   :  { %v185_v55 = vpop.f32.mrf.mxu2 }
 0x1a9   :  { %v186_v56 = vadd.f32 %v221_v52, %v185_v55 }
 0x1ab   :  { %190 = vst.msk [vmem:[%s444_s7 + $0x8] sm:$0xff] %vm188_vm1, %v186_v56 }
 0x1ac   :  { %195 = vsyncpa [#allocation3], 1 }
 0x1ad   :  { %196 = vsyncpa [#allocation5], 1 }

</bundles_post_ra>
